<compile_context>
chip_gen: v7x
topology: tpu7x:2x2x1
jax: 0.10.0
libtpu: 0.0.40
codegen_flags: <defaults>
</compile_context>

<pallas_src>
import functools

import jax
import jax.numpy as jnp
from jax import lax
from jax.experimental import pallas as pl
from jax.experimental.pallas import tpu as pltpu

EPS = 1e-5


# --------------------------------------------------------------------------- #
# Kernel 1: conv (single banded matmul) + per-tile column sum / sum-of-squares #
# --------------------------------------------------------------------------- #
def conv_stats_kernel(x_ref, w_ref, conv_ref, stats_ref):
    """x_ref:     (bpb, H+2, (W+2)*Cin)  zero-padded, channels-last, lane-flat
       w_ref:     (3*(W+2)*Cin, W*Cout)  banded conv matrix
       conv_ref:  (bpb*H, W*Cout)        conv output, lane-dense
       stats_ref: (8, W*Cout)            row 0 = col sums, row 1 = col sumsq
    """
    bpb, hp, wpc = x_ref.shape
    h = hp - 2

    # Three kh-shifted row slabs; the reshape only merges leading dims (no lane
    # relayout).  The kw shift and the channel contraction live inside w_ref.
    rows = [x_ref[:, kh:kh + h, :].reshape(bpb * h, wpc) for kh in range(3)]
    lhs = jnp.concatenate(rows, axis=-1)                      # (bpb*H, 3*(W+2)*Cin)

    acc = jnp.dot(lhs, w_ref[...], preferred_element_type=jnp.float32)
    conv_ref[...] = acc                                       # (bpb*H, W*Cout)

    # Per-tile partial BN statistics (per output lane; folded to per-channel in
    # the wrapper).  Single extra VPU pass for sumsq; no mean/second pass here.
    s = jnp.sum(acc, axis=0, keepdims=True)                   # (1, W*Cout)
    sq = jnp.sum(acc * acc, axis=0, keepdims=True)            # (1, W*Cout)
    pad = jnp.zeros((stats_ref.shape[0] - 2, stats_ref.shape[1]), jnp.float32)
    stats_ref[...] = jnp.concatenate([s, sq, pad], axis=0)


# --------------------------------------------------------------------------- #
# Kernel 2: y = relu(conv * scale + shift), all lane-dense                     #
# --------------------------------------------------------------------------- #
def bn_relu_kernel(c_ref, scale_ref, shift_ref, o_ref):
    o_ref[...] = jnp.maximum(c_ref[...] * scale_ref[...] + shift_ref[...], 0.0)


# --------------------------------------------------------------------------- #
# Wrapper                                                                      #
# --------------------------------------------------------------------------- #
def _pick_boards_per_block(n, h, w, cin, cout):
    """Largest batch tile that divides N, keeps rows a multiple of 8 sublanes,
    fits ~24 MiB of double-buffered VMEM, and targets >=512 matmul rows/step."""
    bytes_per_board = 4 * ((h + 2) * (w + 2) * cin      # input block
                           + 3 * h * (w + 2) * cin      # im2row LHS
                           + h * w * cout)              # conv output block
    vmem_cap = max(1, (24 * 1024 * 1024) // (2 * bytes_per_board))
    bpb = min(n, max(1, -(-512 // h)), vmem_cap)
    while bpb > 1 and (n % bpb or (bpb * h) % 8):
        bpb -= 1
    if (bpb * h) % 8:            # unaligned row block -> single full-dim block
        bpb = n
    return bpb


@functools.partial(jax.jit, static_argnames=("boards_per_block",))
def chess_conv_block(x_nchw, w_oihw, b, gamma, beta, *, boards_per_block=None):
    """Mirrors ChessConvBlock.forward(x) for NCHW float32 input."""
    del b  # conv bias is a per-channel constant -> exactly cancelled by the
           # training-mode BatchNorm mean subtraction (dead work).

    n, cin, h, w = x_nchw.shape
    cout = w_oihw.shape[0]
    f32 = jnp.float32

    # ---- glue: NCHW -> padded channels-last, lanes = (W+2)*Cin --------------
    x_nhwc = jnp.transpose(x_nchw, (0, 2, 3, 1)).astype(f32)
    x_pad = jnp.pad(x_nhwc, ((0, 0), (1, 1), (1, 1), (0, 0)))
    x_flat = x_pad.reshape(n, h + 2, (w + 2) * cin)

    # ---- glue: fold the 3x3 conv into ONE banded (3*(W+2)*Cin, W*Cout) matrix
    # BigW[kh*(W+2)*Cin + (wpos+kw)*Cin + ci, wpos*Cout + co] = W[co, ci, kh, kw]
    w_hwio = jnp.transpose(w_oihw, (2, 3, 1, 0)).astype(f32)      # (3,3,Cin,Cout)
    eye_w = jnp.eye(w, dtype=f32)
    bands = []
    for kh in range(3):
        band = jnp.zeros(((w + 2) * cin, w * cout), f32)
        for kw in range(3):
            blockdiag = jnp.kron(eye_w, w_hwio[kh, kw])           # (W*Cin, W*Cout)
            band = band + jnp.pad(blockdiag,
                                  ((kw * cin, (2 - kw) * cin), (0, 0)))
        bands.append(band)
    big_w = jnp.concatenate(bands, axis=0)                        # (3*(W+2)*Cin, W*Cout)

    bpb = boards_per_block or _pick_boards_per_block(n, h, w, cin, cout)
    if n % bpb:
        raise ValueError(f"boards_per_block={bpb} must divide batch {n}")
    num_blocks = n // bpb
    rows_blk = bpb * h

    cparams = pltpu.CompilerParams(
        dimension_semantics=("parallel",),            # megacore on v7x
        vmem_limit_bytes=32 * 1024 * 1024)            # fits v7x 64 MiB budget

    # ---- pass 1: conv + per-tile partial stats ------------------------------
    conv_flops = 2 * n * h * (3 * (w + 2) * cin) * (w * cout)
    conv_bytes = 4 * (x_flat.size + big_w.size + n * h * w * cout
                      + num_blocks * 8 * w * cout)
    conv2d, stats = pl.pallas_call(
        conv_stats_kernel,
        grid=(num_blocks,),
        in_specs=(
            pl.BlockSpec((bpb, h + 2, (w + 2) * cin), lambda i: (i, 0, 0)),
            pl.BlockSpec((3 * (w + 2) * cin, w * cout), lambda i: (0, 0)),
        ),
        out_specs=(
            pl.BlockSpec((rows_blk, w * cout), lambda i: (i, 0)),
            pl.BlockSpec((8, w * cout), lambda i: (i, 0)),
        ),
        out_shape=(
            jax.ShapeDtypeStruct((n * h, w * cout), f32),
            jax.ShapeDtypeStruct((num_blocks * 8, w * cout), f32),
        ),
        compiler_params=cparams,
        cost_estimate=pl.CostEstimate(flops=conv_flops, transcendentals=0,
                                      bytes_accessed=conv_bytes),
    )(x_flat, big_w)

    # ---- glue: tiny cross-tile fold -> global per-channel scale / shift -----
    m_total = n * h * w
    st = stats.reshape(num_blocks, 8, w * cout)
    ch_sum = jnp.sum(st[:, 0, :], axis=0).reshape(w, cout).sum(axis=0)
    ch_sq = jnp.sum(st[:, 1, :], axis=0).reshape(w, cout).sum(axis=0)
    mean = ch_sum / m_total
    var = jnp.maximum(ch_sq / m_total - mean * mean, 0.0)
    inv_std = lax.rsqrt(var + EPS)
    scale = gamma.astype(f32) * inv_std                           # (Cout,)
    shift = beta.astype(f32) - mean * scale                       # (Cout,)
    scale_row = jnp.tile(scale, w).reshape(1, w * cout)           # lane-dense
    shift_row = jnp.tile(shift, w).reshape(1, w * cout)

    # ---- pass 2: normalize + ReLU -------------------------------------------
    out2d = pl.pallas_call(
        bn_relu_kernel,
        grid=(num_blocks,),
        in_specs=(
            pl.BlockSpec((rows_blk, w * cout), lambda i: (i, 0)),
            pl.BlockSpec((1, w * cout), lambda i: (0, 0)),
            pl.BlockSpec((1, w * cout), lambda i: (0, 0)),
        ),
        out_specs=pl.BlockSpec((rows_blk, w * cout), lambda i: (i, 0)),
        out_shape=jax.ShapeDtypeStruct((n * h, w * cout), f32),
        compiler_params=cparams,
        cost_estimate=pl.CostEstimate(flops=3 * n * h * w * cout, transcendentals=0,
                                      bytes_accessed=8 * n * h * w * cout),
    )(conv2d, scale_row, shift_row)

    # ---- glue: (N*H, W*Cout) -> NCHW ----------------------------------------
    return jnp.transpose(out2d.reshape(n, h, w, cout), (0, 3, 1, 2))


# --------------------------------------------------------------------------- #
# Pure-JAX reference (PyTorch semantics, training-mode BN)                     #
# --------------------------------------------------------------------------- #
def reference_forward(x_nchw, w_oihw, b, gamma, beta):
    conv = lax.conv_general_dilated(
        x_nchw, w_oihw, window_strides=(1, 1), padding=((1, 1), (1, 1)),
        dimension_numbers=("NCHW", "OIHW", "NCHW"),
    ) + b.reshape(1, -1, 1, 1)
    mean = jnp.mean(conv, axis=(0, 2, 3), keepdims=True)
    var = jnp.mean((conv - mean) ** 2, axis=(0, 2, 3), keepdims=True)
    y = (conv - mean) * lax.rsqrt(var + EPS)
    y = y * gamma.reshape(1, -1, 1, 1) + beta.reshape(1, -1, 1, 1)
    return jnp.maximum(y, 0.0)


if __name__ == "__main__":
    key = jax.random.PRNGKey(0)
    k_x, k_w, k_b = jax.random.split(key, 3)

    N, Cin, Cout, H, W = 2, 4, 8, 16, 16

    x = jax.random.normal(k_x, (N, Cin, H, W), dtype=jnp.float32)
    w = 0.1 * jax.random.normal(k_w, (Cout, Cin, 3, 3), dtype=jnp.float32)
    b = 0.05 * jax.random.normal(k_b, (Cout,), dtype=jnp.float32)
    gamma = jnp.ones((Cout,), dtype=jnp.float32)   # PyTorch BN default init
    beta = jnp.zeros((Cout,), dtype=jnp.float32)

    ref = jax.block_until_ready(reference_forward(x, w, b, gamma, beta))

    # Multi-step grid path (2 grid steps -> exercises parallel grid sharding
    # and the cross-tile BN statistics fold).
    out_tiled = jax.block_until_ready(
        chess_conv_block(x, w, b, gamma, beta, boards_per_block=1))
    # Auto-tiled path (largest VMEM-fitting batch tile).
    out_auto = jax.block_until_ready(chess_conv_block(x, w, b, gamma, beta))

    for out in (out_tiled, out_auto):
        assert out.shape == (N, Cout, H, W), out.shape
        err = float(jnp.max(jnp.abs(out - ref)))
        assert jnp.allclose(out, ref, atol=1e-4, rtol=1e-4), err

    print("KERNEL_OK")
</pallas_src>

<mosaic_0001>
module attributes {stable_mosaic.version = 11 : i64} {
  func.func @conv_stats_kernel(%arg0: i32, %arg1: memref<1x18x72xf32, #tpu.memory_space<vmem>>, %arg2: memref<216x128xf32, #tpu.memory_space<vmem>>, %arg3: memref<16x128xf32, #tpu.memory_space<vmem>>, %arg4: memref<8x128xf32, #tpu.memory_space<vmem>>) attributes {dimension_semantics = [#tpu.dimension_semantics<parallel>], iteration_bounds = array<i64: 2>, scalar_prefetch = 0 : i64, scratch_operands = 0 : i64, tpu.core_type = #tpu.core_type<tc>, window_params = [{transform_indices = @transform_0, window_bounds = array<i64: 1, 18, 72>}, {pipeline_mode = #tpu.pipeline_mode<synchronous>, transform_indices = @transform_1, window_bounds = array<i64: 216, 128>}, {transform_indices = @transform_2, window_bounds = array<i64: 16, 128>}, {transform_indices = @transform_3, window_bounds = array<i64: 8, 128>}]} {
    %c0 = arith.constant 0 : index
    %c0_0 = arith.constant 0 : index
    %c0_1 = arith.constant 0 : index
    %0 = vector.load %arg1[%c0, %c0_0, %c0_1] : memref<1x18x72xf32, #tpu.memory_space<vmem>>, vector<1x16x72xf32>
    %1 = vector.shape_cast %0 : vector<1x16x72xf32> to vector<16x72xf32>
    %c0_2 = arith.constant 0 : index
    %c1 = arith.constant 1 : index
    %c0_3 = arith.constant 0 : index
    %2 = vector.load %arg1[%c0_2, %c1, %c0_3] : memref<1x18x72xf32, #tpu.memory_space<vmem>>, vector<1x16x72xf32>
    %3 = vector.shape_cast %2 : vector<1x16x72xf32> to vector<16x72xf32>
    %c0_4 = arith.constant 0 : index
    %c2 = arith.constant 2 : index
    %c0_5 = arith.constant 0 : index
    %4 = vector.load %arg1[%c0_4, %c2, %c0_5] : memref<1x18x72xf32, #tpu.memory_space<vmem>>, vector<1x16x72xf32>
    %5 = vector.shape_cast %4 : vector<1x16x72xf32> to vector<16x72xf32>
    %6 = tpu.concatenate %1, %3, %5 in 1 : vector<16x72xf32>, vector<16x72xf32>, vector<16x72xf32> -> vector<16x216xf32>
    %c0_6 = arith.constant 0 : index
    %c0_7 = arith.constant 0 : index
    %7 = vector.load %arg2[%c0_6, %c0_7] : memref<216x128xf32, #tpu.memory_space<vmem>>, vector<216x128xf32>
    %cst = arith.constant dense<0.000000e+00> : vector<16x128xf32>
    %8 = tpu.matmul %6, %7, %cst {dimension_numbers = #tpu.dot_dimension_numbers<[1], [0], [0], [1], [0, 0, 1, 1], [], []>} : vector<16x216xf32>, vector<216x128xf32>, vector<16x128xf32> -> vector<16x128xf32>
    %c0_8 = arith.constant 0 : index
    %c0_9 = arith.constant 0 : index
    %9 = vector.load %arg3[%c0_8, %c0_9] : memref<16x128xf32, #tpu.memory_space<vmem>>, vector<16x128xf32>
    tpu.vector_store %arg3[%c0_8, %c0_9], %8 {strides = array<i32>} : memref<16x128xf32, #tpu.memory_space<vmem>>, vector<16x128xf32>,
    %cst_10 = arith.constant dense<0.000000e+00> : vector<128xf32>
    %10 = vector.multi_reduction <add>, %8, %cst_10 [0] : vector<16x128xf32> to vector<128xf32>
    %11 = vector.shape_cast %10 : vector<128xf32> to vector<1x128xf32>
    %12 = arith.mulf %8, %8 : vector<16x128xf32>
    %cst_11 = arith.constant dense<0.000000e+00> : vector<128xf32>
    %13 = vector.multi_reduction <add>, %12, %cst_11 [0] : vector<16x128xf32> to vector<128xf32>
    %14 = vector.shape_cast %13 : vector<128xf32> to vector<1x128xf32>
    %cst_12 = arith.constant 0.000000e+00 : f32
    %15 = vector.broadcast %cst_12 : f32 to vector<6x128xf32>
    %16 = tpu.concatenate %11, %14, %15 in 0 : vector<1x128xf32>, vector<1x128xf32>, vector<6x128xf32> -> vector<8x128xf32>
    %c0_13 = arith.constant 0 : index
    %c0_14 = arith.constant 0 : index
    %17 = vector.load %arg4[%c0_13, %c0_14] : memref<8x128xf32, #tpu.memory_space<vmem>>, vector<8x128xf32>
    tpu.vector_store %arg4[%c0_13, %c0_14], %16 {strides = array<i32>} : memref<8x128xf32, #tpu.memory_space<vmem>>, vector<8x128xf32>,
    return
  }
  func.func @transform_0(%arg0: i32) -> (i32, i32, i32) {
    %c0_i32 = arith.constant 0 : i32
    %c0_i32_0 = arith.constant 0 : i32
    %c0_i32_1 = arith.constant 0 : i32
    return %arg0, %c0_i32, %c0_i32_0 : i32, i32, i32
  }
  func.func @transform_1(%arg0: i32) -> (i32, i32) {
    %c0_i32 = arith.constant 0 : i32
    %c0_i32_0 = arith.constant 0 : i32
    %c0_i32_1 = arith.constant 0 : i32
    return %c0_i32, %c0_i32_0 : i32, i32
  }
  func.func @transform_2(%arg0: i32) -> (i32, i32) {
    %c0_i32 = arith.constant 0 : i32
    %c0_i32_0 = arith.constant 0 : i32
    return %arg0, %c0_i32 : i32, i32
  }
  func.func @transform_3(%arg0: i32) -> (i32, i32) {
    %c0_i32 = arith.constant 0 : i32
    %c0_i32_0 = arith.constant 0 : i32
    return %arg0, %c0_i32 : i32, i32
  }
}

module attributes {stable_mosaic.version = 11 : i64} {
  func.func @bn_relu_kernel(%arg0: i32, %arg1: memref<16x128xf32, #tpu.memory_space<vmem>>, %arg2: memref<1x128xf32, #tpu.memory_space<vmem>>, %arg3: memref<1x128xf32, #tpu.memory_space<vmem>>, %arg4: memref<16x128xf32, #tpu.memory_space<vmem>>) attributes {dimension_semantics = [#tpu.dimension_semantics<parallel>], iteration_bounds = array<i64: 2>, scalar_prefetch = 0 : i64, scratch_operands = 0 : i64, tpu.core_type = #tpu.core_type<tc>, window_params = [{transform_indices = @transform_0, window_bounds = array<i64: 16, 128>}, {pipeline_mode = #tpu.pipeline_mode<synchronous>, transform_indices = @transform_1, window_bounds = array<i64: 1, 128>}, {pipeline_mode = #tpu.pipeline_mode<synchronous>, transform_indices = @transform_2, window_bounds = array<i64: 1, 128>}, {transform_indices = @transform_3, window_bounds = array<i64: 16, 128>}]} {
    %c0 = arith.constant 0 : index
    %c0_0 = arith.constant 0 : index
    %0 = vector.load %arg1[%c0, %c0_0] : memref<16x128xf32, #tpu.memory_space<vmem>>, vector<16x128xf32>
    %c0_1 = arith.constant 0 : index
    %c0_2 = arith.constant 0 : index
    %1 = vector.load %arg2[%c0_1, %c0_2] : memref<1x128xf32, #tpu.memory_space<vmem>>, vector<1x128xf32>
    %2 = vector.broadcast %1 : vector<1x128xf32> to vector<16x128xf32>
    %3 = arith.mulf %0, %2 : vector<16x128xf32>
    %c0_3 = arith.constant 0 : index
    %c0_4 = arith.constant 0 : index
    %4 = vector.load %arg3[%c0_3, %c0_4] : memref<1x128xf32, #tpu.memory_space<vmem>>, vector<1x128xf32>
    %5 = vector.broadcast %4 : vector<1x128xf32> to vector<16x128xf32>
    %6 = arith.addf %3, %5 : vector<16x128xf32>
    %cst = arith.constant 0.000000e+00 : f32
    %7 = vector.broadcast %cst : f32 to vector<16x128xf32>
    %8 = arith.maximumf %6, %7 : vector<16x128xf32>
    %c0_5 = arith.constant 0 : index
    %c0_6 = arith.constant 0 : index
    %9 = vector.load %arg4[%c0_5, %c0_6] : memref<16x128xf32, #tpu.memory_space<vmem>>, vector<16x128xf32>
    tpu.vector_store %arg4[%c0_5, %c0_6], %8 {strides = array<i32>} : memref<16x128xf32, #tpu.memory_space<vmem>>, vector<16x128xf32>,
    return
  }
  func.func @transform_0(%arg0: i32) -> (i32, i32) {
    %c0_i32 = arith.constant 0 : i32
    %c0_i32_0 = arith.constant 0 : i32
    return %arg0, %c0_i32 : i32, i32
  }
  func.func @transform_1(%arg0: i32) -> (i32, i32) {
    %c0_i32 = arith.constant 0 : i32
    %c0_i32_0 = arith.constant 0 : i32
    %c0_i32_1 = arith.constant 0 : i32
    return %c0_i32, %c0_i32_0 : i32, i32
  }
  func.func @transform_2(%arg0: i32) -> (i32, i32) {
    %c0_i32 = arith.constant 0 : i32
    %c0_i32_0 = arith.constant 0 : i32
    %c0_i32_1 = arith.constant 0 : i32
    return %c0_i32, %c0_i32_0 : i32, i32
  }
  func.func @transform_3(%arg0: i32) -> (i32, i32) {
    %c0_i32 = arith.constant 0 : i32
    %c0_i32_0 = arith.constant 0 : i32
    return %arg0, %c0_i32 : i32, i32
  }
}

</mosaic_0001>

<bundles_post_ra>
// kernel: tile.13
= control target key start
LH: loop header
LB: loop body
LE: loop exit
PB: predicated region body
PF: predicated region fallthrough
CT: control target
= control target key end

     0   :  { %s28_s0 = inlined_call_operand.vmem [shape: f32[8], index: 0, kind: input, shape index: {}]   ;;  %s29_s1 = inlined_call_operand.vmem [shape: f32[16,8], index: 1, kind: output, shape index: {}]  }
   0x1   :  { %v4_v0 = vld [vmem:[%s28_s0] ss:$0 sm:$0xff] }
   0x2   :  { %5 = vst [vmem:[%s29_s1] sm:$0xff] %v4_v0  ;;  %8 = vst [vmem:[%s29_s1 + $0x8] sm:$0xff] %v4_v0 }

// kernel: tile.14
= control target key start
LH: loop header
LB: loop body
LE: loop exit
PB: predicated region body
PF: predicated region fallthrough
CT: control target
= control target key end

     0   :  { %s131_s10 = smov 120   ;;  %s132_s11 = smov 104   ;;  %vm3_vm0 = vcmask 64512   ;;  %vm9_vm1 = vcmask 1048512   ;;  %vm15_vm2 = vcmask 982912   ;;  %vm21_vm3 = vcmask 917312   ;;  %s207_s0 = inlined_call_operand.vmem [shape: f32[16,8], index: 0, kind: input, shape index: {}]   ;;  %s208_s1 = inlined_call_operand.vmem [shape: f32[1,128], index: 1, kind: output, shape index: {}]  }
   0x1   :  { %v101_v0 = vld [vmem:[%s207_s0 + $0xf] sm:$0x1]   ;;  %v103_v1 = vld [vmem:[%s207_s0 + $0xd] sm:$0x1]   ;;  %v102_v2 = vld [vmem:[%s207_s0 + $0xe] sm:$0x1]  }
   0x2   :  { %7 = vrot.lane.b32.xlu0 %v101_v0, %s131_s10  ;;  %19 = vrot.lane.b32.xlu1 %v103_v1, %s132_s11  ;;  %v104_v3 = vld [vmem:[%s207_s0 + $0xc] sm:$0x1]   ;;  %s133_s16 = smov 112   ;;  %s134_s17 = smov 96   ;;  %v105_v4 = vld [vmem:[%s207_s0 + $0xb] sm:$0x1]  }
   0x3   :  { %v106_v5 = vld [vmem:[%s207_s0 + $0xa] sm:$0x1]   ;;  %v2_v6 = vld [vmem:[%s207_s0] sm:$0x1]   ;;  %s135_s24 = smov 88   ;;  %s136_s25 = smov 80  }
   0x4   :  { %4 = vst.msk [vmem:[#allocation0] sm:$0x1] %vm3_vm0, %v2_v6   ;;  %v107_v7 = vld [vmem:[%s207_s0 + $0x9] sm:$0x1]   ;;  %v108_v8 = vld [vmem:[%s207_s0 + $0x8] sm:$0x1]  }
   0x5   :  { %s137_s30 = smov 72   ;;  %s138_s2 = smov 64   ;;  %v109_v9 = vld [vmem:[%s207_s0 + $0x7] sm:$0x1]   ;;  %v110_v10 = vld [vmem:[%s207_s0 + $0x6] sm:$0x1]  }
   0x6   :  { %13 = vrot.lane.b32.xlu0 %v102_v2, %s133_s16  ;;  %25 = vrot.lane.b32.xlu1 %v104_v3, %s134_s17  ;;  %s139_s7 = smov 56   ;;  %s140_s8 = smov 48   ;;  %v111_v11 = vld [vmem:[%s207_s0 + $0x5] sm:$0x1]   ;;  %v112_v12 = vld [vmem:[%s207_s0 + $0x4] sm:$0x1]  }
   0x7   :  { %s141_s13 = smov 40   ;;  %s142_s14 = smov 32   ;;  %v113_v13 = vld [vmem:[%s207_s0 + $0x3] sm:$0x1]   ;;  %v114_v14 = vld [vmem:[%s207_s0 + $0x2] sm:$0x1]  }
   0x8   :  { %s143_s19 = smov 24   ;;  %s144_s20 = smov 16   ;;  %v115_v15 = vld [vmem:[%s207_s0 + $0x1] sm:$0x1]   ;;  %vm27_vm4 = vcmask 851712   ;;  %vm33_vm5 = vcmask 786112  }
   0x9   :  { %s145_s0 = smov 8   ;;  %vm39_vm6 = vcmask 720512   ;;  %vm45_vm7 = vcmask 654912   ;;  %vm51_vm8 = vcmask 589312   ;;  %vm57_vm9 = vcmask 523712  }
   0xa   :  { %31 = vrot.lane.b32.xlu0 %v105_v4, %s135_s24  ;;  %37 = vrot.lane.b32.xlu1 %v106_v5, %s136_s25  ;;  %vm63_vm10 = vcmask 458112   ;;  %vm69_vm11 = vcmask 392512   ;;  %vm75_vm12 = vcmask 326912   ;;  %vm81_vm13 = vcmask 261312  }
   0xb   :  { %vm87_vm14 = vcmask 195712   ;;  %vm93_vm15 = vcmask 130112  }
   0xe   :  { %43 = vrot.lane.b32.xlu0 %v107_v7, %s137_s30  ;;  %49 = vrot.lane.b32.xlu1 %v108_v8, %s138_s2 }
  0x12   :  { %55 = vrot.lane.b32.xlu0 %v109_v9, %s139_s7  ;;  %61 = vrot.lane.b32.xlu1 %v110_v10, %s140_s8 }
  0x16   :  { %67 = vrot.lane.b32.xlu0 %v111_v11, %s141_s13  ;;  %73 = vrot.lane.b32.xlu1 %v112_v12, %s142_s14 }
  0x1a   :  { %79 = vrot.lane.b32.xlu0 %v113_v13, %s143_s19  ;;  %85 = vrot.lane.b32.xlu1 %v114_v14, %s144_s20 }
  0x1e   :  { %91 = vrot.lane.b32.xlu0 %v115_v15, %s145_s0 }
  0x74   :  { %v8_v16 = vpop.permute.xlu0 %7   ;;  %v20_v17 = vpop.permute.xlu1 %19  }
  0x75   :  { %10 = vst.msk [vmem:[#allocation0] sm:$0x1] %vm9_vm1, %v8_v16  }
  0x78   :  { %v14_v18 = vpop.permute.xlu0 %13   ;;  %v26_v19 = vpop.permute.xlu1 %25  }
  0x79   :  { %16 = vst.msk [vmem:[#allocation0] sm:$0x1] %vm15_vm2, %v14_v18  }
  0x7a   :  { %22 = vst.msk [vmem:[#allocation0] sm:$0x1] %vm21_vm3, %v20_v17  }
  0x7b   :  { %28 = vst.msk [vmem:[#allocation0] sm:$0x1] %vm27_vm4, %v26_v19  }
  0x7c   :  { %v32_v20 = vpop.permute.xlu0 %31   ;;  %v38_v21 = vpop.permute.xlu1 %37  }
  0x7d   :  { %34 = vst.msk [vmem:[#allocation0] sm:$0x1] %vm33_vm5, %v32_v20  }
  0x7e   :  { %40 = vst.msk [vmem:[#allocation0] sm:$0x1] %vm39_vm6, %v38_v21  }
  0x80   :  { %v44_v22 = vpop.permute.xlu0 %43   ;;  %v50_v23 = vpop.permute.xlu1 %49  }
  0x81   :  { %46 = vst.msk [vmem:[#allocation0] sm:$0x1] %vm45_vm7, %v44_v22  }
  0x82   :  { %52 = vst.msk [vmem:[#allocation0] sm:$0x1] %vm51_vm8, %v50_v23  }
  0x84   :  { %v56_v24 = vpop.permute.xlu0 %55   ;;  %v62_v25 = vpop.permute.xlu1 %61  }
  0x85   :  { %58 = vst.msk [vmem:[#allocation0] sm:$0x1] %vm57_vm9, %v56_v24  }
  0x86   :  { %64 = vst.msk [vmem:[#allocation0] sm:$0x1] %vm63_vm10, %v62_v25  }
  0x88   :  { %v68_v26 = vpop.permute.xlu0 %67   ;;  %v74_v27 = vpop.permute.xlu1 %73  }
  0x89   :  { %70 = vst.msk [vmem:[#allocation0] sm:$0x1] %vm69_vm11, %v68_v26  }
  0x8a   :  { %76 = vst.msk [vmem:[#allocation0] sm:$0x1] %vm75_vm12, %v74_v27  }
  0x8c   :  { %v80_v28 = vpop.permute.xlu0 %79   ;;  %v86_v29 = vpop.permute.xlu1 %85  }
  0x8d   :  { %82 = vst.msk [vmem:[#allocation0] sm:$0x1] %vm81_vm13, %v80_v28  }
  0x8e   :  { %88 = vst.msk [vmem:[#allocation0] sm:$0x1] %vm87_vm14, %v86_v29  }
  0x90   :  { %v92_v30 = vpop.permute.xlu0 %91  }
  0x91   :  { %94 = vst.msk [vmem:[#allocation0] sm:$0x1] %vm93_vm15, %v92_v30  }
  0x98   :  { %v98_v31 = vld [vmem:[#allocation0] sm:$0x1] }
  0x99   :  { %100 = vst [vmem:[%s208_s1] sm:$0x1] %v98_v31 }

// kernel: chess_conv_block.3
= control target key start
LH: loop header
LB: loop body
LE: loop exit
PB: predicated region body
PF: predicated region fallthrough
CT: control target
= control target key end

     0   :  { %s303_s12 = smov 0   ;;  %s320_s0 = inlined_call_operand.vmem [shape: f32[32,128], index: 0, kind: input, shape index: {}]   ;;  %s321_s1 = inlined_call_operand.vmem [shape: f32[1,128], index: 1, kind: input, shape index: {}]   ;;  %s322_s2 = inlined_call_operand.vmem [shape: f32[1,128], index: 2, kind: input, shape index: {}]   ;;  %s323_s3 = inlined_call_operand.vmem [shape: f32[32,128], index: 3, kind: output, shape index: {}]  }
   0x1 LB: > { %s254_s13 = sadd.s32 4294967295, %s281_s12   ;;  %p258_p0 = scmp.ge.s32.totalorder %s281_s12, 1  ;;  %s281_s12 = sphi %s303_s12, %s13_s12  }
   0x2   : > { %p138_p1 = scmp.lt.s32.totalorder %s281_s12, 3 }
   0x4   : > { %p139_p2 = pnand %p258_p0, %p138_p1 }
   0x5   : > { %s259_s14 = sshll.u32 (!%p139_p2), %s254_s13, 1  ;;  %v263_v0 = vld [vmem:[%s321_s1] ss:$0 sm:$0xff] (!%p139_p2) }
   0x6   : > { %142 = sbr.rel (%p139_p2) target bundleno = 24 (0x18), region = 32  ;;  %p163_p3 = scmp.lt.s32.totalorder (!%p139_p2), %s259_s14, 3  ;;  %v264_v3 = vld [vmem:[%s322_s2] ss:$0 sm:$0xff] (!%p139_p2) }
   0xd   : > { %s325_s14 = smov (!%p163_p3, %s259_s14), 3 }
   0xe   : > { %s260_s15 = sshll.u32 %s325_s14, 3 }
   0xf   : > { %s166_s20 = scalar_lea.vmem %s320_s0, %s260_s15  ;;  %s172_s25 = scalar_lea.vmem %s323_s3, %s260_s15 }
  0x10   : > { %v174_v1 = vld [vmem:[%s166_s20] sm:$0xff]  ;;  %v175_v2 = vld [vmem:[%s166_s20 + $0x8] sm:$0xff] }
  0x11   : > { %v183_v4 = vmul.f32 %v263_v0, %v174_v1  ;;  %v184_v5 = vmul.f32 %v263_v0, %v175_v2 }
  0x13   : > { %v192_v6 = vadd.f32 %v264_v3, %v183_v4  ;;  %v193_v7 = vadd.f32 %v264_v3, %v184_v5 }
  0x15   : > { %v194_v8 = vmax.f32 %v192_v6, 0.0  ;;  %v195_v9 = vmax.f32 %v193_v7, 0.0 }
  0x17   : > { %196 = vst [vmem:[%s172_s25] sm:$0xff] %v194_v8  ;;  %197 = vst [vmem:[%s172_s25 + $0x8] sm:$0xff] %v195_v9 }
  0x18 PF: > { %s13_s12 = sadd.s32 1, %s281_s12  }
  0x19   : > { %p10_p4 = scmp.ge.s32.totalorder %s13_s12, 4  }
  0x1b   :  { %12 = sbr.rel (!%p10_p4) target bundleno = 1 (0x1), region = 62 }

// kernel: chess_conv_block.2
= control target key start
LH: loop header
LB: loop body
LE: loop exit
PB: predicated region body
PF: predicated region fallthrough
CT: control target
= control target key end

     0   :  { %s555_s12 = smov 0   ;;  %s699_s0 = inlined_call_operand.vmem [shape: f32[2,18,72], index: 0, kind: input, shape index: {}]   ;;  %s700_s1 = inlined_call_operand.vmem [shape: f32[216,128], index: 1, kind: input, shape index: {}]   ;;  %s701_s2 = inlined_call_operand.vmem [shape: f32[32,128], index: 2, kind: output, shape index: {0}]   ;;  %s702_s3 = inlined_call_operand.vmem [shape: f32[16,128], index: 3, kind: output, shape index: {1}]  }
   0x1 LB: > { %s561_s13 = sadd.s32 4294967295, %s529_s12   ;;  %p434_p0 = scmp.ge.s32.totalorder %s529_s12, 1  ;;  %s529_s12 = sphi %s555_s12, %s14_s12  }
   0x2   : > { %p140_p1 = scmp.lt.s32.totalorder %s529_s12, 3 }
   0x4   : > { %p141_p2 = pnand %p434_p0, %p140_p1 }
   0x5   : > { %p168_p3 = scmp.lt.s32.totalorder (!%p141_p2), %s561_s13, 1  ;;  %v211_v0 = vld [vmem:[%s700_s1] sm:$0xff] (!%p141_p2)  ;;  %v212_v1 = vld [vmem:[%s700_s1 + $0x8] sm:$0xff] (!%p141_p2)  ;;  %v213_v2 = vld [vmem:[%s700_s1 + $0x10] sm:$0xff] (!%p141_p2)  ;;  %v531_v3 = vmov (!%p141_p2), 0.0|0.0   ;;  %s532_s4 = smov (!%p141_p2), 16  }
   0x6   : > { %144 = sbr.rel (%p141_p2) target bundleno = 372 (0x174), region = 28  ;;  %443 = vmatprep.subr.bf16.mxu0 (!%p141_p2), %v531_v3  ;;  %v444_v4 = vpack.c.bf16 (!%p141_p2), %v212_v1, %v211_v0  ;;  %482 = vmatprep.subr.bf16.mxu1 (!%p141_p2), %v531_v3  ;;  %v214_v5 = vld [vmem:[%s700_s1 + $0x18] sm:$0xff] (!%p141_p2)  ;;  %v215_v7 = vld [vmem:[%s700_s1 + $0x20] sm:$0xff] (!%p141_p2)  ;;  %v216_v8 = vld [vmem:[%s700_s1 + $0x28] sm:$0xff] (!%p141_p2)  ;;  %s533_s5 = smov (!%p141_p2), 72   ;;  %v534_v44 = vmov (!%p141_p2), 0.0  }
   0x7   : > { %v447_v6 = vpack.c.bf16 (!%p141_p2), %v214_v5, %v213_v2  ;;  %v450_v11 = vpack.c.bf16 (!%p141_p2), %v216_v8, %v215_v7  ;;  %v217_v12 = vld [vmem:[%s700_s1 + $0x30] sm:$0xff] (!%p141_p2)  ;;  %v218_v13 = vld [vmem:[%s700_s1 + $0x38] sm:$0xff] (!%p141_p2)  ;;  %v219_v17 = vld [vmem:[%s700_s1 + $0x40] sm:$0xff] (!%p141_p2)  ;;  %vm208_vm0 = vcmask (!%p141_p2), 130048   ;;  %vm205_vm1 = vcmask (!%p141_p2), 588800   ;;  %s436_s28 = sshll.u32 (!%p141_p2), %s561_s13, 1 }
   0x8   : > { %445 = vmatpush1.bf16.msra.mxu0 (!%p141_p2), %v444_v4  ;;  %496 = vmatpush1.bf16.msra.mxu1 (!%p141_p2), %v444_v4  ;;  %v453_v16 = vpack.c.bf16 (!%p141_p2), %v218_v13, %v217_v12  ;;  %v220_v18 = vld [vmem:[%s700_s1 + $0x48] sm:$0xff] (!%p141_p2)  ;;  %v221_v20 = vld [vmem:[%s700_s1 + $0x50] sm:$0xff] (!%p141_p2)  ;;  %v222_v21 = vld [vmem:[%s700_s1 + $0x58] sm:$0xff] (!%p141_p2)  ;;  %vm238_vm2 = vcmask (!%p141_p2), 719872   ;;  %p174_p4 = scmp.lt.s32.totalorder (!%p141_p2), %s436_s28, 3  ;;  %vm338_vm3 = vcmask (!%p141_p2), 1040384  }
   0x9   : > { %446 = vmatprep.subr.bf16.mxu0 (!%p141_p2), %v531_v3  ;;  %483 = vmatprep.subr.bf16.mxu1 (!%p141_p2), %v531_v3  ;;  %v456_v19 = vpack.c.bf16 (!%p141_p2), %v220_v18, %v219_v17  ;;  %v459_v22 = vpack.c.bf16 (!%p141_p2), %v222_v21, %v221_v20  ;;  %v223_v23 = vld [vmem:[%s700_s1 + $0x60] sm:$0xff] (!%p141_p2)  ;;  %v224_v24 = vld [vmem:[%s700_s1 + $0x68] sm:$0xff] (!%p141_p2)  ;;  %v225_v26 = vld [vmem:[%s700_s1 + $0x70] sm:$0xff] (!%p141_p2)  ;;  %vm340_vm4 = vcmask (!%p141_p2), 1041408  }
   0xa   : > { %v462_v25 = vpack.c.bf16 (!%p141_p2), %v224_v24, %v223_v23  ;;  %v226_v27 = vld [vmem:[%s700_s1 + $0x78] sm:$0xff] (!%p141_p2)  ;;  %v227_v29 = vld [vmem:[%s700_s1 + $0x80] sm:$0xff] (!%p141_p2)  ;;  %v228_v30 = vld [vmem:[%s700_s1 + $0x88] sm:$0xff] (!%p141_p2) }
   0xb   : > { %v465_v28 = vpack.c.bf16 (!%p141_p2), %v226_v27, %v225_v26  ;;  %v468_v31 = vpack.c.bf16 (!%p141_p2), %v228_v30, %v227_v29  ;;  %v229_v32 = vld [vmem:[%s700_s1 + $0x90] sm:$0xff] (!%p141_p2)  ;;  %v230_v33 = vld [vmem:[%s700_s1 + $0x98] sm:$0xff] (!%p141_p2)  ;;  %v231_v35 = vld [vmem:[%s700_s1 + $0xa0] sm:$0xff] (!%p141_p2) }
   0xc   : > { %448 = vmatpush1.bf16.msra.mxu0 (!%p141_p2), %v447_v6  ;;  %497 = vmatpush1.bf16.msra.mxu1 (!%p141_p2), %v447_v6  ;;  %v471_v34 = vpack.c.bf16 (!%p141_p2), %v230_v33, %v229_v32  ;;  %v232_v36 = vld [vmem:[%s700_s1 + $0xa8] sm:$0xff] (!%p141_p2)  ;;  %v233_v38 = vld [vmem:[%s700_s1 + $0xb0] sm:$0xff] (!%p141_p2)  ;;  %v234_v39 = vld [vmem:[%s700_s1 + $0xb8] sm:$0xff] (!%p141_p2) }
   0xd   : > { %s581_s22 = scalar_select %p168_p3, %s561_s13, 1  ;;  %449 = vmatprep.subr.bf16.mxu0 %v531_v3  ;;  %484 = vmatprep.subr.bf16.mxu1 %v531_v3  ;;  %v474_v37 = vpack.c.bf16 %v232_v36, %v231_v35  ;;  %v477_v40 = vpack.c.bf16 %v234_v39, %v233_v38  ;;  %v235_v41 = vld [vmem:[%s700_s1 + $0xc0] sm:$0xff]  ;;  %v236_v42 = vld [vmem:[%s700_s1 + $0xc8] sm:$0xff]  ;;  %v237_v45 = vld [vmem:[%s700_s1 + $0xd0] sm:$0xff] }
   0xe   : > { %v480_v43 = vpack.c.bf16 %v236_v42, %v235_v41  ;;  %s704_s28 = smov (!%p174_p4, %s436_s28), 3 }
   0xf   : > { %s510_s23 = smul.u32 24, %s581_s22  ;;  %s437_s29 = sshll.u32 %s704_s28, 3 }
  0x10   : > { %451 = vmatpush1.bf16.msra.mxu0 %v450_v11  ;;  %498 = vmatpush1.bf16.msra.mxu1 %v450_v11  ;;  %s177_s6 = scalar_lea.vmem %s701_s2, %s437_s29  ;;  %s438_s13 = sshll.u32 %s581_s22, 3 }
  0x11   : > { %s595_s30 = scalar_lea.vmem %s699_s0, %s510_s23  ;;  %452 = vmatprep.subr.bf16.mxu0 %v531_v3  ;;  %485 = vmatprep.subr.bf16.mxu1 %v531_v3  ;;  %s182_s8 = scalar_lea.vmem %s702_s3, %s438_s13 }
  0x12   : > { %v187_v9 = vld [vmem:[%s595_s30 + $0x2] sm:$0xff]  ;;  %v188_v14 = vld [vmem:[%s595_s30 + $0xa] sm:$0xff] }
  0x13   : > { %v185_v10 = vld [vmem:[%s595_s30 + $0x1] sm:$0xff]  ;;  %199 = vrot.lane.b32.xlu1 %v187_v9, %s532_s4  ;;  %v186_v15 = vld [vmem:[%s595_s30 + $0x9] sm:$0xff] }
  0x14   : > { %191 = vrot.lane.b32.xlu0 %v185_v10, %s533_s5  ;;  %454 = vmatpush1.bf16.msra.mxu0 %v453_v16  ;;  %v183_v46 = vld [vmem:[%s595_s30] sm:$0xff]  ;;  %v184_v51 = vld [vmem:[%s595_s30 + $0x8] sm:$0xff] }
  0x15   : > { %499 = vmatpush1.bf16.msra.mxu1 %v453_v16  ;;  %455 = vmatprep.subr.bf16.mxu0 %v531_v3 }
  0x16   : > { %486 = vmatprep.subr.bf16.mxu1 %v531_v3 }
  0x17   : > { %201 = vrot.lane.b32.xlu1 %v188_v14, %s532_s4 }
  0x18   : > { %193 = vrot.lane.b32.xlu0 %v186_v15, %s533_s5  ;;  %457 = vmatpush1.bf16.msra.mxu0 %v456_v19 }
  0x19   : > { %500 = vmatpush1.bf16.msra.mxu1 %v456_v19  ;;  %458 = vmatprep.subr.bf16.mxu0 %v531_v3 }
  0x1a   : > { %487 = vmatprep.subr.bf16.mxu1 %v531_v3 }
  0x1c   : > { %460 = vmatpush1.bf16.msra.mxu0 %v459_v22 }
  0x1d   : > { %501 = vmatpush1.bf16.msra.mxu1 %v459_v22  ;;  %461 = vmatprep.subr.bf16.mxu0 %v531_v3 }
  0x1e   : > { %488 = vmatprep.subr.bf16.mxu1 %v531_v3 }
  0x20   : > { %463 = vmatpush1.bf16.msra.mxu0 %v462_v25 }
  0x21   : > { %502 = vmatpush1.bf16.msra.mxu1 %v462_v25  ;;  %464 = vmatprep.subr.bf16.mxu0 %v531_v3 }
  0x22   : > { %489 = vmatprep.subr.bf16.mxu1 %v531_v3 }
  0x24   : > { %466 = vmatpush1.bf16.msra.mxu0 %v465_v28 }
  0x25   : > { %503 = vmatpush1.bf16.msra.mxu1 %v465_v28  ;;  %467 = vmatprep.subr.bf16.mxu0 %v531_v3 }
  0x26   : > { %490 = vmatprep.subr.bf16.mxu1 %v531_v3 }
  0x28   : > { %469 = vmatpush1.bf16.msra.mxu0 %v468_v31 }
  0x29   : > { %504 = vmatpush1.bf16.msra.mxu1 %v468_v31  ;;  %470 = vmatprep.subr.bf16.mxu0 %v531_v3 }
  0x2a   : > { %491 = vmatprep.subr.bf16.mxu1 %v531_v3 }
  0x2c   : > { %472 = vmatpush1.bf16.msra.mxu0 %v471_v34 }
  0x2d   : > { %505 = vmatpush1.bf16.msra.mxu1 %v471_v34  ;;  %473 = vmatprep.subr.bf16.mxu0 %v531_v3 }
  0x2e   : > { %492 = vmatprep.subr.bf16.mxu1 %v531_v3 }
  0x30   : > { %475 = vmatpush1.bf16.msra.mxu0 %v474_v37 }
  0x31   : > { %506 = vmatpush1.bf16.msra.mxu1 %v474_v37  ;;  %476 = vmatprep.subr.bf16.mxu0 %v531_v3 }
  0x32   : > { %493 = vmatprep.subr.bf16.mxu1 %v531_v3 }
  0x34   : > { %478 = vmatpush1.bf16.msra.mxu0 %v477_v40 }
  0x35   : > { %507 = vmatpush1.bf16.msra.mxu1 %v477_v40  ;;  %479 = vmatprep.subr.bf16.mxu0 %v531_v3 }
  0x36   : > { %494 = vmatprep.subr.bf16.mxu1 %v531_v3 }
  0x38   : > { %481 = vmatpush1.bf16.msra.mxu0 %v480_v43 }
  0x39   : > { %508 = vmatpush1.bf16.msra.mxu1 %v480_v43  ;;  %297 = vmatprep.subr.mxu0 %v534_v44 }
  0x3a   : > { %495 = vmatprep.subr.mxu1 %v534_v44 }
  0x3c   : > { %298 = vmatpush1.msra.mxu0 %v237_v45 }
  0x3d   : > { %509 = vmatpush1.msra.mxu1 %v237_v45 }
  0x85   : > { %v200_v47 = vpop.permute.xlu1 %199 }
  0x86   : > { %v192_v48 = vpop.permute.xlu0 %191 }
  0x87   : > { %v209_v49 = vsel %vm208_vm0, %v192_v48, %v200_v47  ;;  %v206_v50 = vsel %vm205_vm1, %v183_v46, %v192_v48 }
  0x88   : > { %439 = vmatprep.mubr.msk.f32.mxu0 %vm238_vm2, %v209_v49 }
  0x89   : > { %310 = vmatmul.mubr.f32.vlgmr.msra.gmra.mrb[0].mxu0 %v206_v50  ;;  %v202_v52 = vpop.permute.xlu1 %201 }
  0x8a   : > { %v194_v53 = vpop.permute.xlu0 %193 }
  0x8b   : > { %v210_v54 = vsel %vm208_vm0, %v194_v53, %v202_v52  ;;  %v207_v55 = vsel %vm205_vm1, %v184_v51, %v194_v53 }
  0x8c   : > { %440 = vmatprep.mubr.msk.f32.mxu1 %vm238_vm2, %v210_v54 }
  0x8d   : > { %315 = vmatmul.mubr.f32.vlgmr.msra.gmra.mrb[0].mxu1 %v207_v55 }
 0x15c   : > { %v311_v56 = vpop.f32.mrb[0].mxu0 }
 0x15d   : > { %320 = vst [vmem:[%s177_s6] sm:$0xff] %v311_v56  ;;  %v313_v57 = vpop.f32.mrb[1].mxu0  ;;  %v329_v59 = vmul.f32 %v311_v56, %v311_v56 }
 0x160   : > { %v316_v58 = vpop.f32.mrb[0].mxu1 }
 0x161   : > { %321 = vst [vmem:[%s177_s6 + $0x8] sm:$0xff] %v316_v58  ;;  %v322_v60 = vadd.f32 %v316_v58, %v311_v56  ;;  %v330_v61 = vmul.f32 %v316_v58, %v316_v58  ;;  %v318_v62 = vpop.f32.mrb[1].mxu1 }
 0x163   : > { %v323_v63 = vrot.slane %v322_v60, 4  ;;  %v331_v0 = vadd.f32 %v330_v61, %v329_v59 }
 0x165   : > { %v324_v1 = vadd.f32 %v323_v63, %v322_v60  ;;  %v332_v2 = vrot.slane %v331_v0, 4 }
 0x167   : > { %v325_v3 = vrot.slane %v324_v1, 2  ;;  %v333_v4 = vadd.f32 %v332_v2, %v331_v0 }
 0x169   : > { %v326_v5 = vadd.f32 %v325_v3, %v324_v1  ;;  %v334_v6 = vrot.slane %v333_v4, 2 }
 0x16b   : > { %v327_v7 = vrot.slane %v326_v5, 1  ;;  %v335_v8 = vadd.f32 %v334_v6, %v333_v4 }
 0x16d   : > { %v336_v9 = vrot.slane %v335_v8, 1  ;;  %v328_v10 = vadd.f32 %v327_v7, %v326_v5 }
 0x16f   : > { %v337_v11 = vadd.f32 %v336_v9, %v335_v8 }
 0x171   : > { %v339_v12 = vsel %vm338_vm3, %v328_v10, %v337_v11 }
 0x172   : > { %v341_v13 = vsel %vm340_vm4, %v339_v12, 0.0 }
 0x173   : > { %342 = vst [vmem:[%s182_s8] sm:$0xff] %v341_v13 }
 0x174 PF: > { %s14_s12 = sadd.s32 1, %s529_s12  }
 0x175   : > { %p11_p5 = scmp.ge.s32.totalorder %s14_s12, 4  }
 0x177   :  { %13 = sbr.rel (!%p11_p5) target bundleno = 1 (0x1), region = 70 }

</bundles_post_ra>
